<compile_context>
chip_gen: v6e
topology: v6e:2x2x1
jax: 0.10.0
libtpu: 0.0.40
codegen_flags: <defaults>
</compile_context>

<pallas_src>
import functools

import jax
import jax.numpy as jnp
from jax.experimental import pallas as pl
from jax.experimental.pallas import tpu as pltpu


def _irt3pl_kernel(sid_ref, qid_ref, g_hi_ref, g_lo_ref, gamma_ref, out_ref):
    """One batch tile: fused 2-index gather of the logit table + 3PL blend.

    sid_ref, qid_ref : (1, TB)   int32   ids for this batch tile (lane-dense)
    g_hi_ref, g_lo_ref : (Nq, Ns) bf16   hi/lo split of G = alpha@theta^T - ab
    gamma_ref        : (Nq, 1)   f32     sigmoid(gamma_raw), precomputed
    out_ref          : (1, TB)   f32     lane-dense output block
    """
    sid = sid_ref[...]                                   # (1, TB) int32
    qid = qid_ref[...]                                   # (1, TB) int32
    nq, ns = g_hi_ref.shape

    # bf16 one-hot over students from a column-iota compare (0/1 exact in bf16).
    s_onehot = (jax.lax.broadcasted_iota(jnp.int32, (ns, 1), 0) == sid
                ).astype(jnp.bfloat16)                   # (Ns, TB)
    # Boolean question mask; no float one-hot materialized for the q side.
    q_match = jax.lax.broadcasted_iota(jnp.int32, (nq, 1), 0) == qid   # (Nq, TB)

    # Student gather of the logit table: exact-ish 2-pass bf16 (hi + lo),
    # default MXU precision, f32 accumulation.
    m = (jnp.dot(g_hi_ref[...], s_onehot, preferred_element_type=jnp.float32)
         + jnp.dot(g_lo_ref[...], s_onehot, preferred_element_type=jnp.float32))  # (Nq, TB)

    # Question gathers: mask + sublane reduce over the small Nq axis.
    logit = jnp.sum(jnp.where(q_match, m, 0.0), axis=0, keepdims=True)            # (1, TB)
    gamma = jnp.sum(jnp.where(q_match, gamma_ref[...], 0.0),
                    axis=0, keepdims=True)                                        # (1, TB)

    pred = jax.nn.sigmoid(logit)
    # gamma + (1 - gamma) * pred  ==  pred + gamma * (1 - pred)
    out_ref[...] = pred + gamma * (1.0 - pred)


@functools.partial(jax.jit, static_argnames=("tile_b",))
def irt3pl_forward(theta_emb, alpha_emb, beta_emb, gamma_raw_emb,
                   student_ids, question_ids, *, tile_b=2048):
    """Fused IRT-3PL forward: table precompute (wrapper) + gather/blend kernel."""
    b = student_ids.shape[0]
    ns = theta_emb.shape[0]
    nq = alpha_emb.shape[0]

    n_tiles = pl.cdiv(b, tile_b)
    bp = n_tiles * tile_b
    pad = bp - b

    # Lane-dense int32 id vectors; only the ragged tail is padded (id 0 is a
    # valid row; padded lanes are sliced off at the end).
    sid = student_ids.astype(jnp.int32).reshape(1, b)
    qid = question_ids.astype(jnp.int32).reshape(1, b)
    if pad:
        sid = jnp.pad(sid, ((0, 0), (0, pad)))
        qid = jnp.pad(qid, ((0, 0), (0, pad)))

    theta = theta_emb.astype(jnp.float32)                 # (Ns, D)
    alpha = alpha_emb.astype(jnp.float32)                 # (Nq, D)
    beta = beta_emb.astype(jnp.float32)                   # (Nq, D)

    # Batch-independent precompute:
    #   G[q, s] = alpha[q] . theta[s] - alpha[q] . beta[q]
    ab = jnp.sum(alpha * beta, axis=1, keepdims=True)                          # (Nq, 1)
    g = jnp.dot(alpha, theta.T, precision=jax.lax.Precision.HIGHEST) - ab      # (Nq, Ns)
    # bf16 hi/lo split -> two default-precision MXU passes inside the kernel.
    g_hi = g.astype(jnp.bfloat16)
    g_lo = (g - g_hi.astype(jnp.float32)).astype(jnp.bfloat16)
    gamma = jax.nn.sigmoid(gamma_raw_emb.astype(jnp.float32))                  # (Nq, 1)

    ids_spec = pl.BlockSpec((1, tile_b), lambda i: (0, i))

    def full_spec(shape):
        # Full-array block, same index every step -> DMA'd once, VMEM-resident.
        return pl.BlockSpec(shape, lambda i: (0, 0))

    out = pl.pallas_call(
        _irt3pl_kernel,
        out_shape=jax.ShapeDtypeStruct((1, bp), jnp.float32),
        grid_spec=pltpu.PrefetchScalarGridSpec(
            num_scalar_prefetch=0,
            grid=(n_tiles,),
            in_specs=[
                ids_spec,                 # student ids
                ids_spec,                 # question ids
                full_spec((nq, ns)),      # G hi
                full_spec((nq, ns)),      # G lo
                full_spec((nq, 1)),       # sigmoid(gamma_raw)
            ],
            out_specs=ids_spec,
        ),
        compiler_params=pltpu.CompilerParams(
            dimension_semantics=("parallel",)),
    )(sid, qid, g_hi, g_lo, gamma)
    return out[0, :b]                                     # (B,)


def _xavier_normal(key, shape):
    # Same as torch.nn.init.xavier_normal_ for a 2-D weight (symmetric formula).
    std = jnp.sqrt(2.0 / (shape[0] + shape[1]))
    return std * jax.random.normal(key, shape, dtype=jnp.float32)


if __name__ == "__main__":
    num_students, num_questions, num_dim = 16, 12, 32
    batch = 200          # > one tile: exercises tiling + ragged-tail padding
    tile_b = 128         # -> 2 tiles (even count: balanced v7x megacore split)

    key = jax.random.PRNGKey(0)
    k_theta, k_alpha, k_beta, k_gamma, k_sid, k_qid = jax.random.split(key, 6)

    theta_emb = _xavier_normal(k_theta, (num_students, num_dim))
    alpha_emb = _xavier_normal(k_alpha, (num_questions, num_dim))
    beta_emb = _xavier_normal(k_beta, (num_questions, num_dim))
    gamma_raw_emb = _xavier_normal(k_gamma, (num_questions, 1))

    student_ids = jax.random.randint(k_sid, (batch,), 0, num_students)
    question_ids = jax.random.randint(k_qid, (batch,), 0, num_questions)

    pred = irt3pl_forward(theta_emb, alpha_emb, beta_emb, gamma_raw_emb,
                          student_ids, question_ids, tile_b=tile_b)
    pred = jax.block_until_ready(pred)

    # Pure-JAX f32 reference (matches the PyTorch forward).
    theta = jnp.take(theta_emb, student_ids, axis=0)
    alpha = jnp.take(alpha_emb, question_ids, axis=0)
    beta = jnp.take(beta_emb, question_ids, axis=0)
    gamma = jax.nn.sigmoid(jnp.take(gamma_raw_emb, question_ids, axis=0)[:, 0])
    ref = gamma + (1.0 - gamma) * jax.nn.sigmoid(
        jnp.sum(alpha * (theta - beta), axis=1))

    assert pred.shape == (batch,)
    err = float(jnp.max(jnp.abs(pred - ref)))
    assert jnp.allclose(pred, ref, atol=1e-5, rtol=1e-5), err

    print("KERNEL_OK")
</pallas_src>

<mosaic_0001>
module attributes {stable_mosaic.version = 11 : i64} {
  func.func @_irt3pl_kernel(%arg0: i32, %arg1: memref<1x128xi32, #tpu.memory_space<vmem>>, %arg2: memref<1x128xi32, #tpu.memory_space<vmem>>, %arg3: memref<12x16xbf16, #tpu.memory_space<vmem>>, %arg4: memref<12x16xbf16, #tpu.memory_space<vmem>>, %arg5: memref<12x1xf32, #tpu.memory_space<vmem>>, %arg6: memref<1x128xf32, #tpu.memory_space<vmem>>) attributes {dimension_semantics = [#tpu.dimension_semantics<parallel>], iteration_bounds = array<i64: 2>, scalar_prefetch = 0 : i64, scratch_operands = 0 : i64, tpu.core_type = #tpu.core_type<tc>, window_params = [{transform_indices = @transform_0, window_bounds = array<i64: 1, 128>}, {transform_indices = @transform_1, window_bounds = array<i64: 1, 128>}, {pipeline_mode = #tpu.pipeline_mode<synchronous>, transform_indices = @transform_2, window_bounds = array<i64: 12, 16>}, {pipeline_mode = #tpu.pipeline_mode<synchronous>, transform_indices = @transform_3, window_bounds = array<i64: 12, 16>}, {pipeline_mode = #tpu.pipeline_mode<synchronous>, transform_indices = @transform_4, window_bounds = array<i64: 12, 1>}, {transform_indices = @transform_5, window_bounds = array<i64: 1, 128>}]} {
    %c0 = arith.constant 0 : index
    %c0_0 = arith.constant 0 : index
    %0 = vector.load %arg1[%c0, %c0_0] : memref<1x128xi32, #tpu.memory_space<vmem>>, vector<1x128xi32>
    %c0_1 = arith.constant 0 : index
    %c0_2 = arith.constant 0 : index
    %1 = vector.load %arg2[%c0_1, %c0_2] : memref<1x128xi32, #tpu.memory_space<vmem>>, vector<1x128xi32>
    %2 = tpu.iota {dimensions = array<i32: 0>} : vector<16x1xi32>
    %3 = vector.broadcast %2 : vector<16x1xi32> to vector<16x128xi32>
    %4 = vector.broadcast %0 : vector<1x128xi32> to vector<16x128xi32>
    %5 = arith.cmpi eq, %3, %4 : vector<16x128xi32>
    %6 = arith.extui %5 : vector<16x128xi1> to vector<16x128xi32>
    %7 = arith.sitofp %6 : vector<16x128xi32> to vector<16x128xf32>
    %8 = arith.truncf %7 : vector<16x128xf32> to vector<16x128xbf16>
    %9 = tpu.iota {dimensions = array<i32: 0>} : vector<12x1xi32>
    %10 = vector.broadcast %9 : vector<12x1xi32> to vector<12x128xi32>
    %11 = vector.broadcast %1 : vector<1x128xi32> to vector<12x128xi32>
    %12 = arith.cmpi eq, %10, %11 : vector<12x128xi32>
    %c0_3 = arith.constant 0 : index
    %c0_4 = arith.constant 0 : index
    %13 = vector.load %arg3[%c0_3, %c0_4] : memref<12x16xbf16, #tpu.memory_space<vmem>>, vector<12x16xbf16>
    %cst = arith.constant dense<0.000000e+00> : vector<12x128xf32>
    %14 = tpu.matmul %13, %8, %cst {dimension_numbers = #tpu.dot_dimension_numbers<[1], [0], [0], [1], [0, 0, 1, 1], [], []>} : vector<12x16xbf16>, vector<16x128xbf16>, vector<12x128xf32> -> vector<12x128xf32>
    %c0_5 = arith.constant 0 : index
    %c0_6 = arith.constant 0 : index
    %15 = vector.load %arg4[%c0_5, %c0_6] : memref<12x16xbf16, #tpu.memory_space<vmem>>, vector<12x16xbf16>
    %cst_7 = arith.constant dense<0.000000e+00> : vector<12x128xf32>
    %16 = tpu.matmul %15, %8, %cst_7 {dimension_numbers = #tpu.dot_dimension_numbers<[1], [0], [0], [1], [0, 0, 1, 1], [], []>} : vector<12x16xbf16>, vector<16x128xbf16>, vector<12x128xf32> -> vector<12x128xf32>
    %17 = arith.addf %14, %16 : vector<12x128xf32>
    %cst_8 = arith.constant 0.000000e+00 : f32
    %18 = vector.broadcast %cst_8 : f32 to vector<12x128xf32>
    %19 = arith.select %12, %17, %18 : vector<12x128xi1>, vector<12x128xf32>
    %cst_9 = arith.constant dense<0.000000e+00> : vector<128xf32>
    %20 = vector.multi_reduction <add>, %19, %cst_9 [0] : vector<12x128xf32> to vector<128xf32>
    %21 = vector.shape_cast %20 : vector<128xf32> to vector<1x128xf32>
    %c0_10 = arith.constant 0 : index
    %c0_11 = arith.constant 0 : index
    %22 = vector.load %arg5[%c0_10, %c0_11] : memref<12x1xf32, #tpu.memory_space<vmem>>, vector<12x1xf32>
    %cst_12 = arith.constant 0.000000e+00 : f32
    %23 = vector.shape_cast %22 : vector<12x1xf32> to vector<12x1xf32>
    %24 = vector.broadcast %23 : vector<12x1xf32> to vector<12x128xf32>
    %25 = vector.broadcast %cst_12 : f32 to vector<12x128xf32>
    %26 = arith.select %12, %24, %25 : vector<12x128xi1>, vector<12x128xf32>
    %cst_13 = arith.constant dense<0.000000e+00> : vector<128xf32>
    %27 = vector.multi_reduction <add>, %26, %cst_13 [0] : vector<12x128xf32> to vector<128xf32>
    %28 = vector.shape_cast %27 : vector<128xf32> to vector<1x128xf32>
    %29 = arith.negf %21 : vector<1x128xf32>
    %30 = math.exp %29 : vector<1x128xf32>
    %cst_14 = arith.constant 1.000000e+00 : f32
    %31 = vector.broadcast %cst_14 : f32 to vector<1x128xf32>
    %32 = arith.addf %31, %30 : vector<1x128xf32>
    %33 = arith.divf %31, %32 : vector<1x128xf32>
    %cst_15 = arith.constant 1.000000e+00 : f32
    %34 = vector.broadcast %cst_15 : f32 to vector<1x128xf32>
    %35 = arith.subf %34, %33 : vector<1x128xf32>
    %36 = arith.mulf %28, %35 : vector<1x128xf32>
    %37 = arith.addf %33, %36 : vector<1x128xf32>
    %c0_16 = arith.constant 0 : index
    %c0_17 = arith.constant 0 : index
    %38 = vector.load %arg6[%c0_16, %c0_17] : memref<1x128xf32, #tpu.memory_space<vmem>>, vector<1x128xf32>
    tpu.vector_store %arg6[%c0_16, %c0_17], %37 {strides = array<i32>} : memref<1x128xf32, #tpu.memory_space<vmem>>, vector<1x128xf32>,
    return
  }
  func.func @transform_0(%arg0: i32) -> (i32, i32) {
    %c0_i32 = arith.constant 0 : i32
    %c0_i32_0 = arith.constant 0 : i32
    return %c0_i32, %arg0 : i32, i32
  }
  func.func @transform_1(%arg0: i32) -> (i32, i32) {
    %c0_i32 = arith.constant 0 : i32
    %c0_i32_0 = arith.constant 0 : i32
    return %c0_i32, %arg0 : i32, i32
  }
  func.func @transform_2(%arg0: i32) -> (i32, i32) {
    %c0_i32 = arith.constant 0 : i32
    %c0_i32_0 = arith.constant 0 : i32
    %c0_i32_1 = arith.constant 0 : i32
    return %c0_i32, %c0_i32_0 : i32, i32
  }
  func.func @transform_3(%arg0: i32) -> (i32, i32) {
    %c0_i32 = arith.constant 0 : i32
    %c0_i32_0 = arith.constant 0 : i32
    %c0_i32_1 = arith.constant 0 : i32
    return %c0_i32, %c0_i32_0 : i32, i32
  }
  func.func @transform_4(%arg0: i32) -> (i32, i32) {
    %c0_i32 = arith.constant 0 : i32
    %c0_i32_0 = arith.constant 0 : i32
    %c0_i32_1 = arith.constant 0 : i32
    return %c0_i32, %c0_i32_0 : i32, i32
  }
  func.func @transform_5(%arg0: i32) -> (i32, i32) {
    %c0_i32 = arith.constant 0 : i32
    %c0_i32_0 = arith.constant 0 : i32
    return %c0_i32, %arg0 : i32, i32
  }
}

</mosaic_0001>

<bundles_post_ra>
// kernel: irt3pl_forward.1
= control target key start
LH: loop header
LB: loop body
LE: loop exit
PB: predicated region body
PF: predicated region fallthrough
CT: control target
= control target key end

     0   :  { %10 = vsyncpa [#allocation3], 0  ;;  %s768_s0 = inlined_call_operand.vmem [shape: s32[1,256], index: 0, kind: input, shape index: {}]   ;;  %s769_s1 = inlined_call_operand.vmem [shape: s32[1,256], index: 1, kind: input, shape index: {}]   ;;  %s770_s2 = inlined_call_operand.vmem [shape: bf16[12,16], index: 2, kind: input, shape index: {}]   ;;  %s771_s3 = inlined_call_operand.vmem [shape: bf16[12,16], index: 3, kind: input, shape index: {}]   ;;  %s772_s4 = inlined_call_operand.vmem [shape: f32[12,1], index: 4, kind: input, shape index: {}]   ;;  %s773_s5 = inlined_call_operand.hbm [shape: f32[1,256], index: 5, kind: output, shape index: {}]  }
   0x1   :  { %12 = vsyncpa [#allocation3 + $0x1], 0  ;;  %s656_s18 = smov 0   ;;  %s658_s19 = smov 0  }
   0x2   :  { %s660_s20 = smov 0   ;;  %s662_s21 = smov 0  }
   0x3 LB: > { %s677_s22 = sadd.s32 4294967295, %s619_s21   ;;  %s473_s23 = sadd.s32 4294967294, %s619_s21   ;;  %s619_s21 = sphi %s662_s21, %s779_s21   ;;  %s615_s20 = sphi %s660_s20, %s778_s20   ;;  %s611_s19 = sphi %s658_s19, %s777_s19   ;;  %s607_s18 = sphi %s656_s18, %s776_s18  }
   0x4   : > { %s681_s24 = sadd.s32 1, %s619_s21   ;;  %s140_s25 = sadd.s32 1, %s615_s20 }
   0x5   : > { %s137_s26 = ssub.s32 %s619_s21, %s681_s24  ;;  %p150_p0 = scmp.ne.s32.totalorder %s615_s20, %s611_s19 }
   0x6   : > { %p138_p1 = scmp.eq.s32.totalorder %s137_s26, 0  ;;  %p151_p2 = scmp.eq.s32.totalorder %s677_s22, 1 }
   0x7   : > { %p156_p3 = scmp.ne.s32.totalorder %s611_s19, %s607_s18  ;;  %p157_p4 = scmp.eq.s32.totalorder %s473_s23, 1 }
   0x8   : > { %s692_s27 = scalar_select %p138_p1, %s615_s20, %s140_s25  }
   0x9   : > { %p694_p5 = por %p151_p2, %p150_p0  ;;  %p698_p6 = por %p157_p4, %p156_p3 }
   0xa   : > { %p476_p7 = scmp.ge.s32.totalorder %s619_s21, 1  ;;  %p196_p8 = scmp.lt.s32.totalorder %s619_s21, 3 }
   0xc   : > { %p197_p9 = pnand %p476_p7, %p196_p8 }
   0xd   : > { %p224_p10 = scmp.lt.s32.totalorder (!%p197_p9), %s677_s22, 1  ;;  %s222_s26 = sand.u32 (!%p197_p9), 1, %s611_s19  }
   0xe   : > { %200 = sbr.rel (%p197_p9) target bundleno = 296 (0x128), region = 40  ;;  %s223_s6 = scalar_lea.vmem (!%p197_p9), [#allocation2], %s222_s26 }
   0xf   : > { %s412_s7 = sshll.u32 (!%p197_p9), %s223_s6, 4  ;;  %s400_s11 = scalar_lea.sflag (!%p197_p9), [#allocation3], %s222_s26  ;;  %s413_s7 = int_to_ptr.vmem [resolvable:$true] %s412_s7 }
  0x10   : > { %s559_s12 = scalar_lea.vmem (!%p197_p9), %s413_s7, 16  ;;  %s625_s13 = smov (!%p197_p9), [#allocation2]  }
  0x11   : > { %p560_p11 = scmp.ne.s32.totalorder (!%p197_p9), %s413_s7, %s559_s12  ;;  %s563_s14 = sshll.u32 (!%p197_p9), %s625_s13, 4  ;;  %s564_s14 = int_to_ptr.vmem [resolvable:$false] %s563_s14 }
  0x12   : > { %p566_p0 = scmp.lt.s32.totalorder (!%p197_p9), %s413_s7, %s564_s14 }
  0x13   : > { %v233_v0 = vlaneseq  ;;  %v621_v1 = vmov 0.0   ;;  %s706_s30 = scalar_select %p224_p10, %s677_s22, 1  ;;  %vm622_vm0 = vmmov 0   ;;  %v623_v3 = vmov 0   ;;  %v368_v4 = vld [vmem:[%s772_s4 + $0x8] sm:$0xf] }
  0x14   : > { %497 = vmatprep.subr.bf16.mxu0 %v621_v1  ;;  %503 = vmatprep.subr.bf16.mxu1 %v621_v1  ;;  %v367_v7 = vld [vmem:[%s772_s4] sm:$0xff]  ;;  %v624_v10 = vmov 1.0|1.0   ;;  %vm262_vm4 = vcmask 130048   ;;  %vm358_vm6 = vcmask 1043456   ;;  %p561_p12 = pnand %p560_p11, %p694_p5 }
  0x15   : > { %v234_v2 = vshrl.u32 %v233_v0, 7  ;;  %499 = vmatprep.mubr.msk.bf16.mxu0 %vm622_vm0, %v621_v1  ;;  %505 = vmatprep.mubr.msk.bf16.mxu1 %vm622_vm0, %v621_v1  ;;  %s226_s10 = scalar_lea.vmem %s768_s0, %s706_s30  ;;  %v553_v8 = vld [vmem:[%s771_s3] sm:$0x3f]   ;;  %s229_s25 = scalar_lea.vmem %s769_s1, %s706_s30 }
  0x16   : > { %552 = vset.pattern.permute.xlu0 %v623_v3  ;;  %v477_v6 = vld [vmem:[%s226_s10] ss:$0 sm:$0xff]  ;;  %s490_s30 = sshll.u32 %s677_s22, 4  ;;  %p562_p13 = pneg %p561_p12 }
  0x17   : > { %v235_v5 = vadd.s32 8, %v234_v2  ;;  %376 = vperm.xlu0 %552, %v368_v4   ;;  %vm240_vm1 = vcmp.eq.s32.totalorder %v234_v2, %v477_v6  ;;  %v554_v9 = vld [vmem:[%s770_s2] sm:$0x3f]   ;;  %s410_s10 = scalar_lea.hbm %s773_s5, %s490_s30  ;;  %s565_s22 = scalar_lea.vmem %s564_s14, 32 }
  0x18   : > { %v480_v15 = vld [vmem:[%s229_s25] ss:$0 sm:$0xff]  ;;  %p567_p1 = scmp.lt.s32.totalorder %s565_s22, %s559_s12 }
  0x19   : > { %vm241_vm2 = vcmp.eq.s32.totalorder %v235_v5, %v477_v6  ;;  %vm252_vm5 = vcmp.eq.s32.totalorder %v235_v5, %v480_v15  ;;  %vm251_vm7 = vcmp.eq.s32.totalorder %v234_v2, %v480_v15 }
  0x1a   : > { %vm482_vm3 = vmpackc.low %vm241_vm2, %vm240_vm1  ;;  %p568_p2 = por %p567_p1, %p566_p0 }
  0x1b   : > { %498 = vmatpush3.bf16.msk.msra.mxu0 %vm482_vm3, %v624_v10  ;;  %504 = vmatpush3.bf16.msk.msra.mxu1 %vm482_vm3, %v624_v10 }
  0x1c   : > { %371 = vperm.xlu0 %552, %v367_v7   ;;  %p569_p3 = pnand %p568_p2, %p562_p13 }
  0x1e   : > { %500 = vmatmul.mubr.msk.bf16.vlgmr.msra.gmra.mxu0 %vm262_vm4, %v553_v8  ;;  %506 = vmatmul.mubr.msk.bf16.vlgmr.msra.gmra.mxu1 %vm262_vm4, %v554_v9 }
  0x92   : > { %v377_v30 = vpop.permute.xlu0 %376 }
  0x93   : > { %v380_v34 = vsel %vm252_vm5, %v377_v30, 0.0 }
  0x94   : > { %v381_v36 = vsel %vm358_vm6, %v380_v34, 0.0 }
  0x97   : > { %v372_v35 = vpop.permute.xlu0 %371 }
  0x98   : > { %v379_v37 = vsel %vm251_vm7, %v372_v35, 0.0 }
  0x99   : > { %v382_v38 = vadd.f32 %v381_v36, %v379_v37 }
  0x9b   : > { %v383_v39 = vrot.slane %v382_v38, 4 }
  0x9d   : > { %v384_v41 = vadd.f32 %v383_v39, %v382_v38 }
  0x9f   : > { %v385_v43 = vrot.slane %v384_v41, 2 }
  0xa1   : > { %v386_v44 = vadd.f32 %v385_v43, %v384_v41 }
  0xa3   : > { %v387_v45 = vrot.slane %v386_v44, 1 }
  0xa5   : > { %v388_v47 = vadd.f32 %v387_v45, %v386_v44 }
  0xde   : > { %v300_v11 = vpop.f32.mrf.mxu0  ;;  %v349_v12 = vpop.f32.mrf.mxu1 }
  0xdf   : > { %v350_v16 = vadd.f32 %v349_v12, %v300_v11 }
  0xe0   : > { %v501_v13 = vpop.f32.mrf.mxu0  ;;  %v507_v14 = vpop.f32.mrf.mxu1 }
  0xe1   : > { %v356_v24 = vsel %vm251_vm7, %v350_v16, 0.0 }
  0xe2   : > { %v303_v17 = vpop.f32.mrf.mxu0  ;;  %v352_v18 = vpop.f32.mrf.mxu1 }
  0xe3   : > { %v353_v19 = vadd.f32 %v352_v18, %v303_v17 }
  0xe4   : > { %v502_v20 = vpop.f32.mrf.mxu0  ;;  %v508_v21 = vpop.f32.mrf.mxu1 }
  0xe5   : > { %v357_v22 = vsel %vm252_vm5, %v353_v19, 0.0 }
  0xe6   : > { %v359_v23 = vsel %vm358_vm6, %v357_v22, 0.0 }
  0xe7   : > { %v360_v25 = vadd.f32 %v359_v23, %v356_v24 }
  0xe9   : > { %v361_v26 = vrot.slane %v360_v25, 4 }
  0xeb   : > { %v362_v27 = vadd.f32 %v361_v26, %v360_v25 }
  0xed   : > { %v363_v28 = vrot.slane %v362_v27, 2 }
  0xef   : > { %v364_v29 = vadd.f32 %v363_v28, %v362_v27 }
  0xf1   : > { %v365_v31 = vrot.slane %v364_v29, 1 }
  0xf3   : > { %v366_v32 = vadd.f32 %v365_v31, %v364_v29 }
  0xf5   : > { %v489_v33 = vmul.f32 -1.442695, %v366_v32 }
  0xf7   : > { %555 = vpow2.f32 %v489_v33 }
 0x104   : > { %v556_v40 = vpop.eup %555 }
 0x105   : > { %v392_v42 = vadd.f32 1.0, %v556_v40 }
 0x107   : > { %557 = vrcp.f32 %v392_v42 }
 0x114   : > { %v558_v46 = vpop.eup %557 }
 0x115   : > { %v395_v48 = vsub.f32 1.0, %v558_v46 }
 0x117   : > { %v396_v49 = vmul.f32 %v395_v48, %v388_v47 }
 0x119   : > { %v397_v50 = vadd.f32 %v558_v46, %v396_v49 }
 0x11b   : > { %398 = vst [vmem:[%s223_s6] sm:$0x1] %v397_v50 }
 0x11c   : > { %572 = shalt.err (!%p569_p3)
}
 0x11d   : > { %s573_s15 = scalar_lea.hbm %s410_s10, 16  ;;  %s577_s23 = scalar_lea.hbm %s773_s5, 32 }
 0x11e   : > { %p574_p4 = scmp.ne.s32.totalorder %s410_s10, %s573_s15  ;;  %p578_p9 = scmp.lt.s32.totalorder %s410_s10, %s773_s5 }
 0x11f   : > { %p579_p10 = scmp.lt.s32.totalorder %s577_s23, %s573_s15 }
 0x120   : > { %p575_p7 = pnand %p574_p4, %p694_p5 }
 0x121   : > { %p580_p11 = por %p579_p10, %p578_p9 }
 0x122   : > { %p576_p8 = pneg %p575_p7 }
 0x124   : > { %p581_p12 = pnand %p580_p11, %p576_p8 }
 0x126   : > { %584 = shalt.err (!%p581_p12)
}
 0x127   : > { %509 = dma.vmem_to_hbm [thread:$0]  (%p694_p5), %s413_s7, 16, %s410_s10, %s400_s11  }
 0x128 PF: > { %p515_p13 = scmp.ge.s32.totalorder %s619_s21, 2  ;;  %s424_s30 = sand.u32 1, %s607_s18  }
 0x129   : > { %s425_s6 = scalar_lea.sflag [#allocation3], %s424_s30 }
 0x12a   : > { %p512_p0 = pnand %p515_p13, %p698_p6 }
 0x12c   : > { %p513_p1 = pneg %p512_p0 }
 0x12e   : > { %602 = dma.done.wait (%p513_p1), %s425_s6, 16  }
 0x12f   : > { %604 = vsyncadd (%p513_p1), %s425_s6, 4294967280  ;;  %p15_p2 = scmp.ge.s32.totalorder %s681_s24, 4   ;;  %s776_s18 = smov %s611_s19 }
 0x130   : > { %s777_s19 = smov %s615_s20  ;;  %s778_s20 = smov %s692_s27 }
 0x131   : > { %s779_s21 = smov %s681_s24  ;;  %17 = sbr.rel (!%p15_p2) target bundleno = 3 (0x3), region = 78 }
 0x136   :  { %429 = vsyncpa [#allocation3], 1 }
 0x137   :  { %431 = vsyncpa [#allocation3 + $0x1], 1 }

</bundles_post_ra>
